<compile_context>
chip_gen: v5e
topology: v5e:2x2
jax: 0.10.0
libtpu: 0.0.40
codegen_flags: <defaults>
</compile_context>

<pallas_src>
import functools

import jax
import jax.numpy as jnp
from jax import lax
from jax.experimental import pallas as pl
from jax.experimental.pallas import tpu as pltpu


def _vmem_capacity_bytes():
    """Physical VMEM per TensorCore; conservative 64 MiB (v7x) fallback."""
    try:
        info = pltpu.get_tpu_info()
        cap = getattr(info, "vmem_capacity_bytes", None)
        if cap:
            return int(cap)
    except Exception:
        pass
    return 64 * 1024 * 1024


def _select_tiles(B, T, itemsize, target_tile_bytes):
    # --- Last dim (lanes): prefer full T so each tile row is one contiguous burst.
    if T <= 128 or 8 * T * itemsize <= target_tile_bytes:
        TT = T
    else:
        # Must tile T: multiple of 128 lanes, >= ~8 KiB per row chunk so the
        # strided DMA stays near streaming bandwidth.
        tt_cap = (target_tile_bytes // (8 * itemsize)) // 128 * 128
        tt_min = max(128, ((8192 + itemsize - 1) // itemsize) // 128 * 128)
        TT = max(tt_min, tt_cap)
        TT = max(128, min(TT, (T // 128) * 128))
    # --- Second-minor dim (sublanes): multiple of 8, or full B.
    cap_tb = max(8, (target_tile_bytes // (TT * itemsize)) // 8 * 8)
    TB = B if B <= cap_tb else cap_tb
    # Guarantee >= 2 steps on the parallel grid axis (both TCs on v7x).
    if TB >= B and B > 8:
        TB = max(8, ((B // 2) // 8) * 8)
    return TB, TT


def _rae_partials_kernel(baseline_ref, y_pred_ref, y_true_ref, out_ref, acc_ref,
                         *, B, T, TB, TT, SUB, row_rem, col_rem):
    # baseline_ref: SMEM (1, 1) f32 scalar
    # y_pred_ref / y_true_ref: VMEM (TB, TT) tiles
    # out_ref: VMEM (1, 2, 128) per-row-tile partials (num, den), lane-dense
    # acc_ref: VMEM (2*SUB, TT) f32 per-sublane accumulator
    #          rows [0:SUB) = numerator partials, [SUB:2*SUB) = denominator
    i = pl.program_id(0)
    j = pl.program_id(1)
    ncols = pl.num_programs(1)

    @pl.when(j == 0)
    def _init():
        acc_ref[...] = jnp.zeros_like(acc_ref)

    y_pred = y_pred_ref[...].astype(jnp.float32)
    y_true = y_true_ref[...].astype(jnp.float32)
    baseline = baseline_ref[0, 0]

    abs_err = jnp.abs(y_true - y_pred)
    base_err = jnp.abs(y_true - baseline)

    def fold(x):
        # (TB, TT) -> (SUB, TT) per-sublane partial sums via pure VPU vreg adds
        # (static slices; no per-step XLU sublane reduce).
        acc = x[0:SUB, :]
        for g in range(1, TB // SUB):
            acc = acc + x[g * SUB:(g + 1) * SUB, :]
        return acc

    def accumulate(a_err, b_err):
        acc_ref[0:SUB, :] += fold(a_err)
        acc_ref[SUB:2 * SUB, :] += fold(b_err)

    if row_rem or col_rem:
        # Edge-tile gating: interior tiles stay on the unmasked fast path.
        edge_conds = []
        if row_rem:
            edge_conds.append(i == pl.num_programs(0) - 1)
        if col_rem:
            edge_conds.append(j == ncols - 1)
        edge = edge_conds[0]
        for c in edge_conds[1:]:
            edge = jnp.logical_or(edge, c)

        @pl.when(edge)
        def _masked_accumulate():
            mask = None
            if row_rem:
                rows = lax.broadcasted_iota(jnp.int32, (TB, TT), 0) + i * TB
                mask = rows < B
            if col_rem:
                cols = lax.broadcasted_iota(jnp.int32, (TB, TT), 1) + j * TT
                cm = cols < T
                mask = cm if mask is None else jnp.logical_and(mask, cm)
            zero = jnp.float32(0.0)
            accumulate(jnp.where(mask, abs_err, zero),
                       jnp.where(mask, base_err, zero))

        @pl.when(jnp.logical_not(edge))
        def _fast_accumulate():
            accumulate(abs_err, base_err)
    else:
        accumulate(abs_err, base_err)

    @pl.when(j == ncols - 1)
    def _finalize():
        # Single cross-sublane + cross-lane reduce, epilogue only.
        num_total = jnp.sum(acc_ref[0:SUB, :])
        den_total = jnp.sum(acc_ref[SUB:2 * SUB, :])
        sel = lax.broadcasted_iota(jnp.int32, (2, 128), 0) == 0
        out_ref[0] = jnp.where(sel, num_total, den_total)


def rae_loss(y_pred, y_true, y_baseline, *, tile_rows=None, tile_cols=None):
    """Pallas RAE loss. y_pred, y_true: (B, T); y_baseline: scalar."""
    assert y_pred.shape == y_true.shape
    B, T = y_pred.shape
    itemsize = jnp.dtype(y_pred.dtype).itemsize

    vmem_cap = _vmem_capacity_bytes()
    # ~4 MiB/input tile on 64 MiB VMEM (v7x), ~8 MiB on 128 MiB (v5e/v6e).
    target_tile_bytes = max(1 << 20, min(8 << 20, vmem_cap // 16))

    TB, TT = _select_tiles(B, T, itemsize, target_tile_bytes)
    # Optional explicit overrides (used by the tests to force multi-tile paths).
    if tile_rows is not None:
        TB = tile_rows if tile_rows < B else B
        assert TB == B or TB % 8 == 0
    if tile_cols is not None:
        TT = tile_cols if tile_cols < T else T
        assert TT == T or TT % 128 == 0

    R = pl.cdiv(B, TB)
    C = pl.cdiv(T, TT)
    row_rem = (B % TB) != 0
    col_rem = (T % TT) != 0
    SUB = 8 if TB % 8 == 0 else TB

    baseline = jnp.full((1, 1), y_baseline, dtype=jnp.float32)

    # VMEM budget: 2 inputs x 2 pipeline buffers x tile + accumulator + output.
    tile_bytes = TB * TT * itemsize
    scratch_bytes = 2 * SUB * TT * 4
    needed = 4 * tile_bytes + scratch_bytes + 2 * 2 * 128 * 4 + (4 << 20)
    vmem_limit = int(max(32 << 20, min(needed, vmem_cap - (8 << 20))))

    kernel = functools.partial(
        _rae_partials_kernel, B=B, T=T, TB=TB, TT=TT, SUB=SUB,
        row_rem=row_rem, col_rem=col_rem)

    partials = pl.pallas_call(
        kernel,
        out_shape=jax.ShapeDtypeStruct((R, 2, 128), jnp.float32),
        grid_spec=pltpu.PrefetchScalarGridSpec(
            num_scalar_prefetch=0,
            grid=(R, C),  # reduction (col) axis last
            in_specs=[
                pl.BlockSpec(memory_space=pltpu.MemorySpace.SMEM),   # baseline
                pl.BlockSpec((TB, TT), lambda i, j: (i, j)),         # y_pred
                pl.BlockSpec((TB, TT), lambda i, j: (i, j)),         # y_true
            ],
            out_specs=pl.BlockSpec((1, 2, 128), lambda i, j: (i, 0, 0)),
            scratch_shapes=[pltpu.VMEM((2 * SUB, TT), jnp.float32)],
        ),
        compiler_params=pltpu.CompilerParams(
            dimension_semantics=("parallel", "arbitrary"),
            vmem_limit_bytes=vmem_limit,
        ),
        cost_estimate=pl.CostEstimate(
            flops=4 * B * T,
            transcendentals=0,
            bytes_accessed=2 * B * T * itemsize + R * 2 * 128 * 4,
        ),
    )(baseline, y_pred, y_true)

    num = jnp.sum(partials[:, 0, 0])
    den = jnp.sum(partials[:, 1, 0])
    return num / (den + jnp.float32(1e-10))


def _rae_ref(y_pred, y_true, y_baseline):
    y_pred = y_pred.astype(jnp.float32)
    y_true = y_true.astype(jnp.float32)
    return jnp.sum(jnp.abs(y_true - y_pred)) / (
        jnp.sum(jnp.abs(y_true - y_baseline)) + 1e-10)


if __name__ == "__main__":
    key = jax.random.PRNGKey(0)

    # --- Case 1: module-spec shape (batch_size, target_size) = (2, 8) ---
    k1, k2 = jax.random.split(key)
    y_pred = jax.random.normal(k1, (2, 8), dtype=jnp.float32)
    y_true = jax.random.normal(k2, (2, 8), dtype=jnp.float32)
    y_baseline = float(jnp.mean(y_true))   # baseline = mean of training labels
    loss = jax.block_until_ready(rae_loss(y_pred, y_true, y_baseline))
    ref = _rae_ref(y_pred, y_true, y_baseline)
    assert jnp.allclose(loss, ref, rtol=1e-4, atol=1e-6), (loss, ref)

    # --- Case 2: forced small tiles -> multi-step grid, accumulator
    #             init/finalize, and edge-gated remainder masking on both axes.
    k3, k4 = jax.random.split(k2)
    y_pred2 = jax.random.normal(k3, (20, 200), dtype=jnp.float32)
    y_true2 = jax.random.normal(k4, (20, 200), dtype=jnp.float32)
    y_baseline2 = float(jnp.mean(y_true2))
    loss2 = jax.block_until_ready(
        rae_loss(y_pred2, y_true2, y_baseline2, tile_rows=8, tile_cols=128))
    ref2 = _rae_ref(y_pred2, y_true2, y_baseline2)
    assert jnp.allclose(loss2, ref2, rtol=1e-4, atol=1e-6), (loss2, ref2)

    # --- Case 3: default tile selection; exercises the >=2-step parallel-axis
    #             split (both TensorCores on v7x) with no masking needed.
    k5, k6 = jax.random.split(k4)
    y_pred3 = jax.random.normal(k5, (64, 512), dtype=jnp.float32)
    y_true3 = jax.random.normal(k6, (64, 512), dtype=jnp.float32)
    y_baseline3 = float(jnp.mean(y_true3))
    loss3 = jax.block_until_ready(rae_loss(y_pred3, y_true3, y_baseline3))
    ref3 = _rae_ref(y_pred3, y_true3, y_baseline3)
    assert jnp.allclose(loss3, ref3, rtol=1e-4, atol=1e-6), (loss3, ref3)

    print("KERNEL_OK")
</pallas_src>

<mosaic_0001>
module attributes {stable_mosaic.version = 11 : i64} {
  func.func @_rae_partials_kernel(%arg0: i32, %arg1: i32, %arg2: memref<1x1xf32, #tpu.memory_space<smem>>, %arg3: memref<2x8xf32, #tpu.memory_space<vmem>>, %arg4: memref<2x8xf32, #tpu.memory_space<vmem>>, %arg5: memref<1x2x128xf32, #tpu.memory_space<vmem>>, %arg6: memref<4x8xf32, #tpu.memory_space<vmem>>) attributes {dimension_semantics = [#tpu.dimension_semantics<parallel>, #tpu.dimension_semantics<arbitrary>], iteration_bounds = array<i64: 1, 1>, scalar_prefetch = 0 : i64, scratch_operands = 1 : i64, tpu.core_type = #tpu.core_type<tc>, window_params = [{transform_indices = @transform_0, window_bounds = array<i64: 1, 1>}, {transform_indices = @transform_1, window_bounds = array<i64: 2, 8>}, {transform_indices = @transform_2, window_bounds = array<i64: 2, 8>}, {transform_indices = @transform_3, window_bounds = array<i64: 1, 2, 128>}]} {
    %c0_i32 = arith.constant 0 : i32
    %0 = arith.cmpi eq, %arg1, %c0_i32 : i32
    %1 = arith.extui %0 : i1 to i32
    %c0_i32_0 = arith.constant 0 : i32
    %2 = arith.cmpi ne, %1, %c0_i32_0 : i32
    scf.if %2 {
      %cst = arith.constant 0.000000e+00 : f32
      %20 = vector.broadcast %cst : f32 to vector<4x8xf32>
      %c0_15 = arith.constant 0 : index
      %c0_16 = arith.constant 0 : index
      %21 = vector.load %arg6[%c0_15, %c0_16] : memref<4x8xf32, #tpu.memory_space<vmem>>, vector<4x8xf32>
      tpu.vector_store %arg6[%c0_15, %c0_16], %20 {strides = array<i32>} : memref<4x8xf32, #tpu.memory_space<vmem>>, vector<4x8xf32>,
    } else {
    }
    %c0 = arith.constant 0 : index
    %c0_1 = arith.constant 0 : index
    %3 = vector.load %arg3[%c0, %c0_1] : memref<2x8xf32, #tpu.memory_space<vmem>>, vector<2x8xf32>
    %c0_2 = arith.constant 0 : index
    %c0_3 = arith.constant 0 : index
    %4 = vector.load %arg4[%c0_2, %c0_3] : memref<2x8xf32, #tpu.memory_space<vmem>>, vector<2x8xf32>
    %c0_4 = arith.constant 0 : index
    %c0_5 = arith.constant 0 : index
    %5 = memref.load %arg2[%c0_4, %c0_5] : memref<1x1xf32, #tpu.memory_space<smem>>
    %6 = arith.subf %4, %3 : vector<2x8xf32>
    %7 = math.absf %6 : vector<2x8xf32>
    %8 = vector.broadcast %5 : f32 to vector<2x8xf32>
    %9 = arith.subf %4, %8 : vector<2x8xf32>
    %10 = math.absf %9 : vector<2x8xf32>
    %c0_6 = arith.constant 0 : index
    %c0_7 = arith.constant 0 : index
    %11 = vector.load %arg6[%c0_6, %c0_7] : memref<4x8xf32, #tpu.memory_space<vmem>>, vector<2x8xf32>
    %12 = arith.addf %11, %7 : vector<2x8xf32>
    %c0_8 = arith.constant 0 : index
    %c0_9 = arith.constant 0 : index
    %13 = vector.load %arg6[%c0_8, %c0_9] : memref<4x8xf32, #tpu.memory_space<vmem>>, vector<2x8xf32>
    tpu.vector_store %arg6[%c0_8, %c0_9], %12 {strides = array<i32>} : memref<4x8xf32, #tpu.memory_space<vmem>>, vector<2x8xf32>,
    %c2 = arith.constant 2 : index
    %c0_10 = arith.constant 0 : index
    %14 = vector.load %arg6[%c2, %c0_10] : memref<4x8xf32, #tpu.memory_space<vmem>>, vector<2x8xf32>
    %15 = arith.addf %14, %10 : vector<2x8xf32>
    %c2_11 = arith.constant 2 : index
    %c0_12 = arith.constant 0 : index
    %16 = vector.load %arg6[%c2_11, %c0_12] : memref<4x8xf32, #tpu.memory_space<vmem>>, vector<2x8xf32>
    tpu.vector_store %arg6[%c2_11, %c0_12], %15 {strides = array<i32>} : memref<4x8xf32, #tpu.memory_space<vmem>>, vector<2x8xf32>,
    %c0_i32_13 = arith.constant 0 : i32
    %17 = arith.cmpi eq, %arg1, %c0_i32_13 : i32
    %18 = arith.extui %17 : i1 to i32
    %c0_i32_14 = arith.constant 0 : i32
    %19 = arith.cmpi ne, %18, %c0_i32_14 : i32
    scf.if %19 {
      %c0_15 = arith.constant 0 : index
      %c0_16 = arith.constant 0 : index
      %20 = vector.load %arg6[%c0_15, %c0_16] : memref<4x8xf32, #tpu.memory_space<vmem>>, vector<2x8xf32>
      %21 = vector.shape_cast %20 : vector<2x8xf32> to vector<1x2x8xf32>
      %cst = arith.constant dense<0.000000e+00> : vector<1xf32>
      %22 = vector.multi_reduction <add>, %21, %cst [1, 2] : vector<1x2x8xf32> to vector<1xf32>
      %23 = vector.shape_cast %22 : vector<1xf32> to vector<1x1x1xf32>
      %24 = vector.extract %23[0, 0, 0] : f32 from vector<1x1x1xf32>
      %c2_17 = arith.constant 2 : index
      %c0_18 = arith.constant 0 : index
      %25 = vector.load %arg6[%c2_17, %c0_18] : memref<4x8xf32, #tpu.memory_space<vmem>>, vector<2x8xf32>
      %26 = vector.shape_cast %25 : vector<2x8xf32> to vector<1x2x8xf32>
      %cst_19 = arith.constant dense<0.000000e+00> : vector<1xf32>
      %27 = vector.multi_reduction <add>, %26, %cst_19 [1, 2] : vector<1x2x8xf32> to vector<1xf32>
      %28 = vector.shape_cast %27 : vector<1xf32> to vector<1x1x1xf32>
      %29 = vector.extract %28[0, 0, 0] : f32 from vector<1x1x1xf32>
      %30 = tpu.iota {dimensions = array<i32: 0>} : vector<2x128xi32>
      %c0_i32_20 = arith.constant 0 : i32
      %31 = vector.broadcast %c0_i32_20 : i32 to vector<2x128xi32>
      %32 = arith.cmpi eq, %30, %31 : vector<2x128xi32>
      %33 = vector.broadcast %24 : f32 to vector<2x128xf32>
      %34 = vector.broadcast %29 : f32 to vector<2x128xf32>
      %35 = arith.select %32, %33, %34 : vector<2x128xi1>, vector<2x128xf32>
      %c0_21 = arith.constant 0 : index
      %c0_22 = arith.constant 0 : index
      %c0_23 = arith.constant 0 : index
      %36 = vector.load %arg5[%c0_21, %c0_22, %c0_23] : memref<1x2x128xf32, #tpu.memory_space<vmem>>, vector<1x2x128xf32>
      %37 = vector.shape_cast %36 : vector<1x2x128xf32> to vector<2x128xf32>
      %38 = vector.shape_cast %35 : vector<2x128xf32> to vector<1x2x128xf32>
      tpu.vector_store %arg5[%c0_21, %c0_22, %c0_23], %38 {strides = array<i32>} : memref<1x2x128xf32, #tpu.memory_space<vmem>>, vector<1x2x128xf32>,
    } else {
    }
    return
  }
  func.func @transform_0(%arg0: i32, %arg1: i32) -> (i32, i32) {
    %c0_i32 = arith.constant 0 : i32
    %c0_i32_0 = arith.constant 0 : i32
    %c0_i32_1 = arith.constant 0 : i32
    return %c0_i32, %c0_i32_0 : i32, i32
  }
  func.func @transform_1(%arg0: i32, %arg1: i32) -> (i32, i32) {
    %c0_i32 = arith.constant 0 : i32
    return %arg0, %arg1 : i32, i32
  }
  func.func @transform_2(%arg0: i32, %arg1: i32) -> (i32, i32) {
    %c0_i32 = arith.constant 0 : i32
    return %arg0, %arg1 : i32, i32
  }
  func.func @transform_3(%arg0: i32, %arg1: i32) -> (i32, i32, i32) {
    %c0_i32 = arith.constant 0 : i32
    %c0_i32_0 = arith.constant 0 : i32
    %c0_i32_1 = arith.constant 0 : i32
    return %arg0, %c0_i32, %c0_i32_0 : i32, i32, i32
  }
}

</mosaic_0001>

<bundles_post_ra>
// kernel: tpu_custom_call.1
= control target key start
LH: loop header
LB: loop body
LE: loop exit
PB: predicated region body
PF: predicated region fallthrough
CT: control target
= control target key end

     0   :  { %9 = vsyncpa [#allocation5], 0  ;;  %s194_s0 = inlined_call_operand.<no memory space> [shape: f32[1,1], index: 0, kind: input, shape index: {}]   ;;  %s195_s1 = inlined_call_operand.vmem [shape: f32[2,8], index: 1, kind: input, shape index: {}]   ;;  %s196_s2 = inlined_call_operand.hbm [shape: f32[2,8], index: 2, kind: input, shape index: {}]   ;;  %s197_s3 = inlined_call_operand.hbm [shape: f32[1,2,128], index: 3, kind: output, shape index: {}]  }
   0x1   :  { %10 = vsyncpa [#allocation6], 0  ;;  %s20_s14 = sshll.u32 %s196_s2, 4  ;;  %s159_s15 = smov [#allocation4]   ;;  %s21_s14 = int_to_ptr.hbm [resolvable:$true] %s20_s14 }
   0x2   :  { %s22_s16 = sshll.u32 %s159_s15, 4  ;;  %s23_s16 = int_to_ptr.vmem [resolvable:$true] %s22_s16 }
   0x3   :  { %25 = dma.hbm_to_vmem [thread:$0]  %s21_s14, 32, %s23_s16, [#allocation5]  }
   0x4   :  { %155 = dma.done.wait [#allocation5], 32  }
   0x5   :  { %156 = vsyncadd [#allocation5], 4294967264  ;;  %vm34_vm0 = vcmask 60416   ;;  %v160_v0 = vmov 0.0   ;;  %v41_v1 = vstv %s194_s0  ;;  %v36_v2 = vld [vmem:[%s195_s1] sm:$0x3]  ;;  %v76_v30 = vlaneseq }
   0x6   :  { %35 = vst.msk [vmem:[#allocation2] sm:$0xf] %vm34_vm0, %v160_v0  ;;  %v37_v3 = vld [vmem:[#allocation4] sm:$0x3]  ;;  %vm46_vm1 = vcmask 58368   ;;  %s161_s0 = smov [#allocation7]  }
   0x7   :  { %v39_v4 = vsub.f32 %v37_v3, %v36_v2  ;;  %v42_v5 = vsub.f32 %v37_v3, %v41_v1  ;;  %v77_v31 = vshrl.u32 %v76_v30, 7  ;;  %s88_s1 = sshll.u32 %s161_s0, 4  ;;  %s90_s23 = sshll.u32 %s197_s3, 4  ;;  %s89_s1 = int_to_ptr.vmem [resolvable:$true] %s88_s1  ;;  %s91_s23 = int_to_ptr.hbm [resolvable:$true] %s90_s23 }
   0x9   :  { %v40_v8 = vand.u32 2147483647, %v39_v4  ;;  %v43_v9 = vand.u32 2147483647, %v42_v5  ;;  %vm78_vm2 = vcmp.eq.s32.totalorder %v77_v31, 0 }
   0xd   :  { %v44_v6 = vld [vmem:[#allocation2] sm:$0x3]  ;;  %v48_v7 = vld [vmem:[#allocation2 + $0x2] sm:$0x3] }
   0xe   :  { %v45_v10 = vadd.f32 %v44_v6, %v40_v8  ;;  %v49_v11 = vadd.f32 %v48_v7, %v43_v9 }
  0x10   :  { %47 = vst.msk [vmem:[#allocation2] sm:$0x3] %vm46_vm1, %v45_v10 }
  0x11   :  { %50 = vst.msk [vmem:[#allocation2 + $0x2] sm:$0x3] %vm46_vm1, %v49_v11 }
  0x17   :  { %v54_v12 = vld [vmem:[#allocation2] sm:$0x3] }
  0x18   :  { %v55_v13 = vsel %vm46_vm1, %v54_v12, 0.0  ;;  %v65_v14 = vld [vmem:[#allocation2 + $0x2] sm:$0x3] }
  0x19   :  { %56 = vadd.xlane.f32.xlu0 %v55_v13  ;;  %v66_v15 = vsel %vm46_vm1, %v65_v14, 0.0 }
  0x21   :  { %67 = vadd.xlane.f32.xlu0 %v66_v15 }
  0x8c   :  { %v57_v16 = vpop.xlane.xlu0 %56 }
  0x8d   :  { %v58_v17 = vrot.slane %v57_v16, 4 }
  0x8f   :  { %v59_v18 = vadd.f32 %v58_v17, %v57_v16 }
  0x91   :  { %v60_v19 = vrot.slane %v59_v18, 2 }
  0x93   :  { %v61_v20 = vadd.f32 %v60_v19, %v59_v18 }
  0x94   :  { %v68_v21 = vpop.xlane.xlu0 %67 }
  0x95   :  { %v69_v22 = vrot.slane %v68_v21, 4  ;;  %v62_v23 = vrot.slane %v61_v20, 1 }
  0x97   :  { %v70_v24 = vadd.f32 %v69_v22, %v68_v21  ;;  %v63_v25 = vadd.f32 %v62_v23, %v61_v20 }
  0x99   :  { %v71_v26 = vrot.slane %v70_v24, 2  ;;  %100 = vpush %v63_v25 }
  0x9b   :  { %v72_v27 = vadd.f32 %v71_v26, %v70_v24 }
  0x9d   :  { %v73_v28 = vrot.slane %v72_v27, 1 }
  0x9f   :  { %v74_v29 = vadd.f32 %v73_v28, %v72_v27 }
  0xa1   :  { %102 = vpush %v74_v29 }
  0xca   :  { %s101_s2 = spop %100 }
  0xcb   :  { %v79_v32 = vstv %s101_s2 }
  0xd2   :  { %s103_s24 = spop %102 }
  0xd3   :  { %v80_v33 = vstv %s103_s24 }
  0xd4   :  { %v81_v34 = vsel %vm78_vm2, %v79_v32, %v80_v33 }
  0xd5   :  { %82 = vst [vmem:[#allocation7] sm:$0x3] %v81_v34 }
  0xd6   :  { %93 = dma.vmem_to_hbm [thread:$0]  %s89_s1, 32, %s91_s23, [#allocation6]  }
  0xd7   :  { %157 = dma.done.wait [#allocation6], 32  }
  0xd8   :  { %158 = vsyncadd [#allocation6], 4294967264 }
  0xd9   :  { %98 = vsyncpa [#allocation5], 1 }
  0xda   :  { %99 = vsyncpa [#allocation6], 1 }

</bundles_post_ra>
